<compile_context>
chip_gen: v5e
topology: v5e:2x2
jax: 0.10.0
libtpu: 0.0.40
codegen_flags: <defaults>
</compile_context>

<pallas_src>
import jax
import jax.numpy as jnp
from jax.experimental import pallas as pl
from jax.experimental.pallas import tpu as pltpu


def _round_up(n, m):
    return (n + m - 1) // m * m


def value_head_kernel(x_ref, a_ref,
                      w1x_ref, w1a_ref, b1_ref, g1_ref, be1_ref,
                      w2_ref, b2_ref, g2_ref, be2_ref,
                      o_ref):
    eps = 1e-5  # PyTorch nn.LayerNorm default

    # ---- fc1 on the implicit concat: [x, a] @ W1 = x @ W1x + a @ W1a (MXU, bf16) ----
    h = jnp.dot(x_ref[...], w1x_ref[...], preferred_element_type=jnp.float32)
    h = h + jnp.dot(a_ref[...], w1a_ref[...], preferred_element_type=jnp.float32)
    h = h + b1_ref[...]

    # ---- LayerNorm(hidden): single fused stats pass ----
    inv_h = 1.0 / h.shape[-1]
    s1 = jnp.sum(h, axis=-1, keepdims=True)
    s2 = jnp.sum(h * h, axis=-1, keepdims=True)
    mu = s1 * inv_h
    var = s2 * inv_h - mu * mu
    h = (h - mu) * jax.lax.rsqrt(var + eps)
    h = h * g1_ref[...] + be1_ref[...]

    # ---- ReLU, then cast to bf16 for the second MXU pass ----
    h = jnp.maximum(h, 0.0).astype(jnp.bfloat16)

    # ---- fc2 ----
    y = jnp.dot(h, w2_ref[...], preferred_element_type=jnp.float32)
    y = y + b2_ref[...]

    # ---- LayerNorm(odim): single fused stats pass ----
    inv_o = 1.0 / y.shape[-1]
    t1 = jnp.sum(y, axis=-1, keepdims=True)
    t2 = jnp.sum(y * y, axis=-1, keepdims=True)
    mu2 = t1 * inv_o
    var2 = t2 * inv_o - mu2 * mu2
    y = (y - mu2) * jax.lax.rsqrt(var2 + eps)
    y = y * g2_ref[...] + be2_ref[...]

    # ---- ReLU + sigmoid ----
    y = jnp.maximum(y, 0.0)
    o_ref[...] = jax.nn.sigmoid(y).astype(o_ref.dtype)


def value_head_forward(x, act, params, *, tile_b=512):
    """x: (B, hdim) f32, act: (B, adim) f32. Returns (B, odim) f32."""
    B, hdim = x.shape
    Ba, adim = act.shape
    assert B == Ba, "x and act must have the same batch size"
    hidden = params["w1"].shape[1]
    odim = params["w2"].shape[1]

    # Batch tile: as large as requested, capped at the (8-rounded) batch size.
    tile = _round_up(min(tile_b, _round_up(B, 8)), 8)
    B_pad = _round_up(B, tile)
    if B_pad != B:
        pad = B_pad - B
        x = jnp.pad(x, ((0, pad), (0, 0)))
        act = jnp.pad(act, ((0, pad), (0, 0)))

    grid = (B_pad // tile,)

    # bf16 operands for the MXU; biases / LN params stay f32.
    x_bf = x.astype(jnp.bfloat16)
    a_bf = act.astype(jnp.bfloat16)
    w1 = params["w1"].astype(jnp.bfloat16)
    w1x = w1[:hdim]           # (hdim, hidden)
    w1a = w1[hdim:]           # (adim, hidden)
    w2 = params["w2"].astype(jnp.bfloat16)

    # Per-batch-tile specs for x / act / out; full (grid-invariant) specs for params.
    x_spec = pl.BlockSpec((tile, hdim), lambda i: (i, 0))
    a_spec = pl.BlockSpec((tile, adim), lambda i: (i, 0))
    o_spec = pl.BlockSpec((tile, odim), lambda i: (i, 0))

    def full_spec(r, c):
        return pl.BlockSpec((r, c), lambda i: (0, 0))

    # Explicit scoped-VMEM budget: streamed tiles (double-buffered) + resident
    # weights + headroom for the f32 intermediates; clamped to [32, 64] MiB so
    # it is safe on every generation (v7x physical VMEM is 64 MiB per core).
    est_bytes = (2 * (tile * (hdim + adim) * 2 + tile * odim * 4)
                 + 2 * ((hdim + adim) * hidden + hidden * odim) * 2
                 + 8 * tile * hidden * 4)
    vmem_limit = int(min(64 * 1024 * 1024, max(32 * 1024 * 1024, 2 * est_bytes)))

    out = pl.pallas_call(
        value_head_kernel,
        out_shape=jax.ShapeDtypeStruct((B_pad, odim), jnp.float32),
        grid_spec=pltpu.PrefetchScalarGridSpec(
            num_scalar_prefetch=0,
            grid=grid,
            in_specs=[
                x_spec,
                a_spec,
                full_spec(hdim, hidden),    # w1 (x half)
                full_spec(adim, hidden),    # w1 (act half)
                full_spec(1, hidden),       # b1
                full_spec(1, hidden),       # ln1 gamma
                full_spec(1, hidden),       # ln1 beta
                full_spec(hidden, odim),    # w2
                full_spec(1, odim),         # b2
                full_spec(1, odim),         # ln2 gamma
                full_spec(1, odim),         # ln2 beta
            ],
            out_specs=o_spec,
        ),
        compiler_params=pltpu.CompilerParams(
            dimension_semantics=("parallel",),
            vmem_limit_bytes=vmem_limit),
    )(x_bf, a_bf, w1x, w1a,
      params["b1"], params["g1"], params["be1"],
      w2, params["b2"], params["g2"], params["be2"])

    return out[:B]


def init_params(key, hdim, adim, hidden, odim):
    """Deterministic synthetic parameters matching ValueHead's shapes.

    Linear weights are stored pre-transposed: (in_features, out_features).
    """
    k1, k2, k3, k4, k5, k6 = jax.random.split(key, 6)
    w1 = jax.random.normal(k1, (hdim + adim, hidden), jnp.float32) * 0.1
    b1 = jax.random.normal(k2, (1, hidden), jnp.float32) * 0.1
    w2 = jax.random.normal(k3, (hidden, odim), jnp.float32) * 0.1
    b2 = jax.random.normal(k4, (1, odim), jnp.float32) * 0.1
    # LayerNorm affine params (PyTorch default is ones/zeros; keep them
    # non-trivial + deterministic to exercise the affine path).
    g1 = 1.0 + 0.1 * jax.random.normal(k5, (1, hidden), jnp.float32)
    be1 = jnp.zeros((1, hidden), jnp.float32)
    g2 = 1.0 + 0.1 * jax.random.normal(k6, (1, odim), jnp.float32)
    be2 = jnp.zeros((1, odim), jnp.float32)
    return dict(w1=w1, b1=b1, g1=g1, be1=be1, w2=w2, b2=b2, g2=g2, be2=be2)


def reference_forward(x, act, p):
    """Pure-JAX f32 reference matching the PyTorch semantics."""
    eps = 1e-5
    xin = jnp.concatenate([x, act], axis=-1)
    h = xin @ p["w1"] + p["b1"]
    mu = h.mean(-1, keepdims=True)
    var = ((h - mu) ** 2).mean(-1, keepdims=True)
    h = (h - mu) / jnp.sqrt(var + eps) * p["g1"] + p["be1"]
    h = jnp.maximum(h, 0.0)
    y = h @ p["w2"] + p["b2"]
    mu2 = y.mean(-1, keepdims=True)
    var2 = ((y - mu2) ** 2).mean(-1, keepdims=True)
    y = (y - mu2) / jnp.sqrt(var2 + eps) * p["g2"] + p["be2"]
    y = jnp.maximum(y, 0.0)
    return jax.nn.sigmoid(y)


if __name__ == "__main__":
    # ValueHead(hdim, adim, odim) with the module-fixed hidden=256.
    hdim, adim, odim = 32, 32, 16
    hidden = 256
    batch = 64

    key = jax.random.PRNGKey(0)
    kx, ka, kp = jax.random.split(key, 3)
    x = jax.random.normal(kx, (batch, hdim), jnp.float32)
    act = jax.random.normal(ka, (batch, adim), jnp.float32)
    params = init_params(kp, hdim, adim, hidden, odim)

    # tile_b=32 -> grid of 2 parallel batch steps (keeps both v7x TCs busy);
    # for large batches the default tile_b=512 amortizes per-step overhead.
    out = value_head_forward(x, act, params, tile_b=32)
    out = jax.block_until_ready(out)

    ref = reference_forward(x, act, params)
    assert out.shape == (batch, odim)
    # bf16 MXU operands -> loosened tolerance vs the f32 reference.
    assert jnp.allclose(out, ref, atol=2e-2, rtol=2e-2), "mismatch vs reference"

    print("KERNEL_OK")
</pallas_src>

<mosaic_0001>
module attributes {stable_mosaic.version = 11 : i64} {
  func.func @value_head_kernel(%arg0: i32, %arg1: memref<32x32xbf16, #tpu.memory_space<vmem>>, %arg2: memref<32x32xbf16, #tpu.memory_space<vmem>>, %arg3: memref<32x256xbf16, #tpu.memory_space<vmem>>, %arg4: memref<32x256xbf16, #tpu.memory_space<vmem>>, %arg5: memref<1x256xf32, #tpu.memory_space<vmem>>, %arg6: memref<1x256xf32, #tpu.memory_space<vmem>>, %arg7: memref<1x256xf32, #tpu.memory_space<vmem>>, %arg8: memref<256x16xbf16, #tpu.memory_space<vmem>>, %arg9: memref<1x16xf32, #tpu.memory_space<vmem>>, %arg10: memref<1x16xf32, #tpu.memory_space<vmem>>, %arg11: memref<1x16xf32, #tpu.memory_space<vmem>>, %arg12: memref<32x16xf32, #tpu.memory_space<vmem>>) attributes {dimension_semantics = [#tpu.dimension_semantics<parallel>], iteration_bounds = array<i64: 2>, scalar_prefetch = 0 : i64, scratch_operands = 0 : i64, tpu.core_type = #tpu.core_type<tc>, window_params = [{transform_indices = @transform_0, window_bounds = array<i64: 32, 32>}, {transform_indices = @transform_1, window_bounds = array<i64: 32, 32>}, {pipeline_mode = #tpu.pipeline_mode<synchronous>, transform_indices = @transform_2, window_bounds = array<i64: 32, 256>}, {pipeline_mode = #tpu.pipeline_mode<synchronous>, transform_indices = @transform_3, window_bounds = array<i64: 32, 256>}, {pipeline_mode = #tpu.pipeline_mode<synchronous>, transform_indices = @transform_4, window_bounds = array<i64: 1, 256>}, {pipeline_mode = #tpu.pipeline_mode<synchronous>, transform_indices = @transform_5, window_bounds = array<i64: 1, 256>}, {pipeline_mode = #tpu.pipeline_mode<synchronous>, transform_indices = @transform_6, window_bounds = array<i64: 1, 256>}, {pipeline_mode = #tpu.pipeline_mode<synchronous>, transform_indices = @transform_7, window_bounds = array<i64: 256, 16>}, {pipeline_mode = #tpu.pipeline_mode<synchronous>, transform_indices = @transform_8, window_bounds = array<i64: 1, 16>}, {pipeline_mode = #tpu.pipeline_mode<synchronous>, transform_indices = @transform_9, window_bounds = array<i64: 1, 16>}, {pipeline_mode = #tpu.pipeline_mode<synchronous>, transform_indices = @transform_10, window_bounds = array<i64: 1, 16>}, {transform_indices = @transform_11, window_bounds = array<i64: 32, 16>}]} {
    %c0 = arith.constant 0 : index
    %c0_0 = arith.constant 0 : index
    %0 = vector.load %arg1[%c0, %c0_0] : memref<32x32xbf16, #tpu.memory_space<vmem>>, vector<32x32xbf16>
    %c0_1 = arith.constant 0 : index
    %c0_2 = arith.constant 0 : index
    %1 = vector.load %arg3[%c0_1, %c0_2] : memref<32x256xbf16, #tpu.memory_space<vmem>>, vector<32x256xbf16>
    %cst = arith.constant dense<0.000000e+00> : vector<32x256xf32>
    %2 = tpu.matmul %0, %1, %cst {dimension_numbers = #tpu.dot_dimension_numbers<[1], [0], [0], [1], [0, 0, 1, 1], [], []>} : vector<32x32xbf16>, vector<32x256xbf16>, vector<32x256xf32> -> vector<32x256xf32>
    %c0_3 = arith.constant 0 : index
    %c0_4 = arith.constant 0 : index
    %3 = vector.load %arg2[%c0_3, %c0_4] : memref<32x32xbf16, #tpu.memory_space<vmem>>, vector<32x32xbf16>
    %c0_5 = arith.constant 0 : index
    %c0_6 = arith.constant 0 : index
    %4 = vector.load %arg4[%c0_5, %c0_6] : memref<32x256xbf16, #tpu.memory_space<vmem>>, vector<32x256xbf16>
    %cst_7 = arith.constant dense<0.000000e+00> : vector<32x256xf32>
    %5 = tpu.matmul %3, %4, %cst_7 {dimension_numbers = #tpu.dot_dimension_numbers<[1], [0], [0], [1], [0, 0, 1, 1], [], []>} : vector<32x32xbf16>, vector<32x256xbf16>, vector<32x256xf32> -> vector<32x256xf32>
    %6 = arith.addf %2, %5 : vector<32x256xf32>
    %c0_8 = arith.constant 0 : index
    %c0_9 = arith.constant 0 : index
    %7 = vector.load %arg5[%c0_8, %c0_9] : memref<1x256xf32, #tpu.memory_space<vmem>>, vector<1x256xf32>
    %8 = vector.broadcast %7 : vector<1x256xf32> to vector<32x256xf32>
    %9 = arith.addf %6, %8 : vector<32x256xf32>
    %cst_10 = arith.constant dense<0.000000e+00> : vector<32xf32>
    %10 = vector.multi_reduction <add>, %9, %cst_10 [1] : vector<32x256xf32> to vector<32xf32>
    %11 = vector.shape_cast %10 : vector<32xf32> to vector<32x1xf32>
    %12 = arith.mulf %9, %9 : vector<32x256xf32>
    %cst_11 = arith.constant dense<0.000000e+00> : vector<32xf32>
    %13 = vector.multi_reduction <add>, %12, %cst_11 [1] : vector<32x256xf32> to vector<32xf32>
    %14 = vector.shape_cast %13 : vector<32xf32> to vector<32x1xf32>
    %cst_12 = arith.constant 3.906250e-03 : f32
    %15 = vector.broadcast %cst_12 : f32 to vector<32x1xf32>
    %16 = arith.mulf %11, %15 : vector<32x1xf32>
    %cst_13 = arith.constant 3.906250e-03 : f32
    %17 = vector.broadcast %cst_13 : f32 to vector<32x1xf32>
    %18 = arith.mulf %14, %17 : vector<32x1xf32>
    %19 = arith.mulf %16, %16 : vector<32x1xf32>
    %20 = arith.subf %18, %19 : vector<32x1xf32>
    %21 = vector.broadcast %16 : vector<32x1xf32> to vector<32x256xf32>
    %22 = arith.subf %9, %21 : vector<32x256xf32>
    %cst_14 = arith.constant 9.99999974E-6 : f32
    %23 = vector.broadcast %cst_14 : f32 to vector<32x1xf32>
    %24 = arith.addf %20, %23 : vector<32x1xf32>
    %25 = math.rsqrt %24 : vector<32x1xf32>
    %26 = vector.broadcast %25 : vector<32x1xf32> to vector<32x256xf32>
    %27 = arith.mulf %22, %26 : vector<32x256xf32>
    %c0_15 = arith.constant 0 : index
    %c0_16 = arith.constant 0 : index
    %28 = vector.load %arg6[%c0_15, %c0_16] : memref<1x256xf32, #tpu.memory_space<vmem>>, vector<1x256xf32>
    %29 = vector.broadcast %28 : vector<1x256xf32> to vector<32x256xf32>
    %30 = arith.mulf %27, %29 : vector<32x256xf32>
    %c0_17 = arith.constant 0 : index
    %c0_18 = arith.constant 0 : index
    %31 = vector.load %arg7[%c0_17, %c0_18] : memref<1x256xf32, #tpu.memory_space<vmem>>, vector<1x256xf32>
    %32 = vector.broadcast %31 : vector<1x256xf32> to vector<32x256xf32>
    %33 = arith.addf %30, %32 : vector<32x256xf32>
    %cst_19 = arith.constant 0.000000e+00 : f32
    %34 = vector.broadcast %cst_19 : f32 to vector<32x256xf32>
    %35 = arith.maximumf %33, %34 : vector<32x256xf32>
    %36 = arith.truncf %35 : vector<32x256xf32> to vector<32x256xbf16>
    %c0_20 = arith.constant 0 : index
    %c0_21 = arith.constant 0 : index
    %37 = vector.load %arg8[%c0_20, %c0_21] : memref<256x16xbf16, #tpu.memory_space<vmem>>, vector<256x16xbf16>
    %cst_22 = arith.constant dense<0.000000e+00> : vector<32x16xf32>
    %38 = tpu.matmul %36, %37, %cst_22 {dimension_numbers = #tpu.dot_dimension_numbers<[1], [0], [0], [1], [0, 0, 1, 1], [], []>} : vector<32x256xbf16>, vector<256x16xbf16>, vector<32x16xf32> -> vector<32x16xf32>
    %c0_23 = arith.constant 0 : index
    %c0_24 = arith.constant 0 : index
    %39 = vector.load %arg9[%c0_23, %c0_24] : memref<1x16xf32, #tpu.memory_space<vmem>>, vector<1x16xf32>
    %40 = vector.broadcast %39 : vector<1x16xf32> to vector<32x16xf32>
    %41 = arith.addf %38, %40 : vector<32x16xf32>
    %cst_25 = arith.constant dense<0.000000e+00> : vector<32xf32>
    %42 = vector.multi_reduction <add>, %41, %cst_25 [1] : vector<32x16xf32> to vector<32xf32>
    %43 = vector.shape_cast %42 : vector<32xf32> to vector<32x1xf32>
    %44 = arith.mulf %41, %41 : vector<32x16xf32>
    %cst_26 = arith.constant dense<0.000000e+00> : vector<32xf32>
    %45 = vector.multi_reduction <add>, %44, %cst_26 [1] : vector<32x16xf32> to vector<32xf32>
    %46 = vector.shape_cast %45 : vector<32xf32> to vector<32x1xf32>
    %cst_27 = arith.constant 6.250000e-02 : f32
    %47 = vector.broadcast %cst_27 : f32 to vector<32x1xf32>
    %48 = arith.mulf %43, %47 : vector<32x1xf32>
    %cst_28 = arith.constant 6.250000e-02 : f32
    %49 = vector.broadcast %cst_28 : f32 to vector<32x1xf32>
    %50 = arith.mulf %46, %49 : vector<32x1xf32>
    %51 = arith.mulf %48, %48 : vector<32x1xf32>
    %52 = arith.subf %50, %51 : vector<32x1xf32>
    %53 = vector.broadcast %48 : vector<32x1xf32> to vector<32x16xf32>
    %54 = arith.subf %41, %53 : vector<32x16xf32>
    %cst_29 = arith.constant 9.99999974E-6 : f32
    %55 = vector.broadcast %cst_29 : f32 to vector<32x1xf32>
    %56 = arith.addf %52, %55 : vector<32x1xf32>
    %57 = math.rsqrt %56 : vector<32x1xf32>
    %58 = vector.broadcast %57 : vector<32x1xf32> to vector<32x16xf32>
    %59 = arith.mulf %54, %58 : vector<32x16xf32>
    %c0_30 = arith.constant 0 : index
    %c0_31 = arith.constant 0 : index
    %60 = vector.load %arg10[%c0_30, %c0_31] : memref<1x16xf32, #tpu.memory_space<vmem>>, vector<1x16xf32>
    %61 = vector.broadcast %60 : vector<1x16xf32> to vector<32x16xf32>
    %62 = arith.mulf %59, %61 : vector<32x16xf32>
    %c0_32 = arith.constant 0 : index
    %c0_33 = arith.constant 0 : index
    %63 = vector.load %arg11[%c0_32, %c0_33] : memref<1x16xf32, #tpu.memory_space<vmem>>, vector<1x16xf32>
    %64 = vector.broadcast %63 : vector<1x16xf32> to vector<32x16xf32>
    %65 = arith.addf %62, %64 : vector<32x16xf32>
    %cst_34 = arith.constant 0.000000e+00 : f32
    %66 = vector.broadcast %cst_34 : f32 to vector<32x16xf32>
    %67 = arith.maximumf %65, %66 : vector<32x16xf32>
    %68 = arith.negf %67 : vector<32x16xf32>
    %69 = math.exp %68 : vector<32x16xf32>
    %cst_35 = arith.constant 1.000000e+00 : f32
    %70 = vector.broadcast %cst_35 : f32 to vector<32x16xf32>
    %71 = arith.addf %70, %69 : vector<32x16xf32>
    %72 = arith.divf %70, %71 : vector<32x16xf32>
    %c0_36 = arith.constant 0 : index
    %c0_37 = arith.constant 0 : index
    %73 = vector.load %arg12[%c0_36, %c0_37] : memref<32x16xf32, #tpu.memory_space<vmem>>, vector<32x16xf32>
    tpu.vector_store %arg12[%c0_36, %c0_37], %72 {strides = array<i32>} : memref<32x16xf32, #tpu.memory_space<vmem>>, vector<32x16xf32>,
    return
  }
  func.func @transform_0(%arg0: i32) -> (i32, i32) {
    %c0_i32 = arith.constant 0 : i32
    %c0_i32_0 = arith.constant 0 : i32
    return %arg0, %c0_i32 : i32, i32
  }
  func.func @transform_1(%arg0: i32) -> (i32, i32) {
    %c0_i32 = arith.constant 0 : i32
    %c0_i32_0 = arith.constant 0 : i32
    return %arg0, %c0_i32 : i32, i32
  }
  func.func @transform_2(%arg0: i32) -> (i32, i32) {
    %c0_i32 = arith.constant 0 : i32
    %c0_i32_0 = arith.constant 0 : i32
    %c0_i32_1 = arith.constant 0 : i32
    return %c0_i32, %c0_i32_0 : i32, i32
  }
  func.func @transform_3(%arg0: i32) -> (i32, i32) {
    %c0_i32 = arith.constant 0 : i32
    %c0_i32_0 = arith.constant 0 : i32
    %c0_i32_1 = arith.constant 0 : i32
    return %c0_i32, %c0_i32_0 : i32, i32
  }
  func.func @transform_4(%arg0: i32) -> (i32, i32) {
    %c0_i32 = arith.constant 0 : i32
    %c0_i32_0 = arith.constant 0 : i32
    %c0_i32_1 = arith.constant 0 : i32
    return %c0_i32, %c0_i32_0 : i32, i32
  }
  func.func @transform_5(%arg0: i32) -> (i32, i32) {
    %c0_i32 = arith.constant 0 : i32
    %c0_i32_0 = arith.constant 0 : i32
    %c0_i32_1 = arith.constant 0 : i32
    return %c0_i32, %c0_i32_0 : i32, i32
  }
  func.func @transform_6(%arg0: i32) -> (i32, i32) {
    %c0_i32 = arith.constant 0 : i32
    %c0_i32_0 = arith.constant 0 : i32
    %c0_i32_1 = arith.constant 0 : i32
    return %c0_i32, %c0_i32_0 : i32, i32
  }
  func.func @transform_7(%arg0: i32) -> (i32, i32) {
    %c0_i32 = arith.constant 0 : i32
    %c0_i32_0 = arith.constant 0 : i32
    %c0_i32_1 = arith.constant 0 : i32
    return %c0_i32, %c0_i32_0 : i32, i32
  }
  func.func @transform_8(%arg0: i32) -> (i32, i32) {
    %c0_i32 = arith.constant 0 : i32
    %c0_i32_0 = arith.constant 0 : i32
    %c0_i32_1 = arith.constant 0 : i32
    return %c0_i32, %c0_i32_0 : i32, i32
  }
  func.func @transform_9(%arg0: i32) -> (i32, i32) {
    %c0_i32 = arith.constant 0 : i32
    %c0_i32_0 = arith.constant 0 : i32
    %c0_i32_1 = arith.constant 0 : i32
    return %c0_i32, %c0_i32_0 : i32, i32
  }
  func.func @transform_10(%arg0: i32) -> (i32, i32) {
    %c0_i32 = arith.constant 0 : i32
    %c0_i32_0 = arith.constant 0 : i32
    %c0_i32_1 = arith.constant 0 : i32
    return %c0_i32, %c0_i32_0 : i32, i32
  }
  func.func @transform_11(%arg0: i32) -> (i32, i32) {
    %c0_i32 = arith.constant 0 : i32
    %c0_i32_0 = arith.constant 0 : i32
    return %arg0, %c0_i32 : i32, i32
  }
}

</mosaic_0001>

<bundles_post_ra>
// kernel: tpu_custom_call.1
= control target key start
LH: loop header
LB: loop body
LE: loop exit
PB: predicated region body
PF: predicated region fallthrough
CT: control target
= control target key end

     0   :  { %s1467_s17 = smov 0   ;;  %s1738_s0 = inlined_call_operand.vmem [shape: bf16[64,32], index: 0, kind: input, shape index: {}]   ;;  %s1739_s1 = inlined_call_operand.vmem [shape: bf16[64,32], index: 1, kind: input, shape index: {}]   ;;  %s1740_s2 = inlined_call_operand.vmem [shape: bf16[32,256], index: 2, kind: input, shape index: {}]   ;;  %s1741_s3 = inlined_call_operand.vmem [shape: bf16[32,256], index: 3, kind: input, shape index: {}]   ;;  %s1742_s4 = inlined_call_operand.vmem [shape: f32[1,256], index: 4, kind: input, shape index: {}]   ;;  %s1743_s5 = inlined_call_operand.vmem [shape: f32[1,256], index: 5, kind: input, shape index: {}]   ;;  %s1744_s6 = inlined_call_operand.vmem [shape: f32[1,256], index: 6, kind: input, shape index: {}]   ;;  %s1745_s7 = inlined_call_operand.vmem [shape: bf16[256,16], index: 7, kind: input, shape index: {}]   ;;  %s1746_s8 = inlined_call_operand.vmem [shape: f32[1,16], index: 8, kind: input, shape index: {}]   ;;  %s1747_s9 = inlined_call_operand.vmem [shape: f32[1,16], index: 9, kind: input, shape index: {}]   ;;  %s1748_s10 = inlined_call_operand.vmem [shape: f32[1,16], index: 10, kind: input, shape index: {}]   ;;  %s1749_s11 = inlined_call_operand.vmem [shape: f32[64,16], index: 11, kind: output, shape index: {}]  }
   0x1 LB: > { %s1175_s18 = sadd.s32 4294967295, %s1405_s17   ;;  %p1179_p0 = scmp.ge.s32.totalorder %s1405_s17, 1  ;;  %s1405_s17 = sphi %s1467_s17, %s21_s17  }
   0x2   : > { %p349_p1 = scmp.lt.s32.totalorder %s1405_s17, 3 }
   0x4   : > { %p350_p2 = pnand %p1179_p0, %p349_p1 }
   0x5   : > { %s1180_s15 = sshll.u32 (!%p350_p2), %s1175_s18, 2 }
   0x6   : > { %353 = sbr.rel (%p350_p2) target bundleno = 679 (0x2a7), region = 64  ;;  %p395_p3 = scmp.lt.s32.totalorder (!%p350_p2), %s1180_s15, 7 }
   0xb   : > { %v1204_v0 = vld [vmem:[%s1741_s3 + $0x10] sm:$0xf]  ;;  %v1323_v1 = vld [vmem:[%s1741_s3 + $0x14] sm:$0xf0]  ;;  %v1322_v2 = vld [vmem:[%s1741_s3 + $0x14] sm:$0xf] }
   0xc   : > { %v1205_v3 = vor.u32 %v1323_v1, %v1204_v0  ;;  %v1206_v4 = vld [vmem:[%s1741_s3 + $0x18] sm:$0xf0]  ;;  %v1232_v5 = vld [vmem:[%s1740_s2 + $0x10] sm:$0xf]  ;;  %v1317_v6 = vld [vmem:[%s1740_s2 + $0x14] sm:$0xf0] }
   0xd   : > { %v1209_v7 = vor.u32 %v1322_v2, %v1206_v4  ;;  %v1233_v8 = vor.u32 %v1317_v6, %v1232_v5  ;;  %v1316_v9 = vld [vmem:[%s1740_s2 + $0x14] sm:$0xf]  ;;  %v1234_v10 = vld [vmem:[%s1740_s2 + $0x18] sm:$0xf0]  ;;  %v1196_v11 = vld [vmem:[%s1741_s3] sm:$0xf] }
   0xe   : > { %472 = vmatpush.bf16.msra.mxu0 %v1205_v3  ;;  %v1237_v12 = vor.u32 %v1316_v9, %v1234_v10  ;;  %v1321_v13 = vld [vmem:[%s1741_s3 + $0x4] sm:$0xf0]  ;;  %v1320_v14 = vld [vmem:[%s1741_s3 + $0x4] sm:$0xf]  ;;  %v1198_v15 = vld [vmem:[%s1741_s3 + $0x8] sm:$0xf0] }
   0xf   : > { %491 = vmatpush.bf16.msra.mxu1 %v1209_v7  ;;  %546 = vmatpush.bf16.msra.mxu2 %v1233_v8  ;;  %v1197_v16 = vor.u32 %v1321_v13, %v1196_v11  ;;  %v1201_v17 = vor.u32 %v1320_v14, %v1198_v15  ;;  %v1224_v18 = vld [vmem:[%s1740_s2] sm:$0xf]  ;;  %v1315_v19 = vld [vmem:[%s1740_s2 + $0x4] sm:$0xf0]  ;;  %v1314_v20 = vld [vmem:[%s1740_s2 + $0x4] sm:$0xf] }
  0x10   : > { %565 = vmatpush.bf16.msra.mxu3 %v1237_v12  ;;  %v1225_v21 = vor.u32 %v1315_v19, %v1224_v18  ;;  %v1226_v22 = vld [vmem:[%s1740_s2 + $0x8] sm:$0xf0]  ;;  %s1751_s15 = smov (!%p395_p3, %s1180_s15), 7  ;;  %vm459_vm0 = vcmask 261120   ;;  %v578_v30 = vld [vmem:[%s1742_s4] sm:$0x3] }
  0x11   : > { %v1229_v23 = vor.u32 %v1314_v20, %v1226_v22  ;;  %s1181_s16 = sshll.u32 %s1751_s15, 2  ;;  %v580_v31 = vperm.slane %v578_v30, 0  ;;  %v581_v32 = vperm.slane %v578_v30, 1  ;;  %v1331_v15 = vld [vmem:[%s1745_s7 + $0x38] sm:$0xff]  ;;  %v1338_v18 = vld [vmem:[%s1745_s7 + $0x70] sm:$0xff]  ;;  %v1329_v19 = vld [vmem:[%s1745_s7 + $0x28] sm:$0xff] }
  0x12   : > { %473 = vmatpush.bf16.msra.mxu0 %v1197_v16  ;;  %s404_s21 = scalar_lea.vmem %s1739_s1, %s1181_s16  ;;  %s398_s18 = scalar_lea.vmem %s1738_s0, %s1181_s16  ;;  %v1339_v16 = vld [vmem:[%s1745_s7 + $0x78] sm:$0xff]  ;;  %v1337_v20 = vld [vmem:[%s1745_s7 + $0x68] sm:$0xff]  ;;  %v1336_v22 = vld [vmem:[%s1745_s7 + $0x60] sm:$0xff]  ;;  %vm910_vm13 = vcmask 130048  }
  0x13   : > { %492 = vmatpush.bf16.msra.mxu1 %v1201_v17  ;;  %547 = vmatpush.bf16.msra.mxu2 %v1225_v21  ;;  %v1318_v24 = vld [vmem:[%s404_s21] sm:$0xff]  ;;  %v1319_v26 = vld [vmem:[%s404_s21 + $0x8] sm:$0xff]  ;;  %v1330_v17 = vld [vmem:[%s1745_s7 + $0x30] sm:$0xff]  ;;  %s1185_s16 = sshll.u32 %s1751_s15, 3 }
  0x14   : > { %566 = vmatpush.bf16.msra.mxu3 %v1229_v23  ;;  %v1312_v25 = vld [vmem:[%s398_s18] sm:$0xff]  ;;  %v1313_v27 = vld [vmem:[%s398_s18 + $0x8] sm:$0xff]  ;;  %v1327_v23 = vld [vmem:[%s1745_s7 + $0x18] sm:$0xff]  ;;  %s1725_s21 = scalar_lea.vmem %s1749_s11, %s1185_s16 }
  0x15   : > { %1210 = vmatmul.msk.bf16.vlgmr.msra.gmra.mxu0 %vm459_vm0, %v1318_v24  ;;  %v1328_v21 = vld [vmem:[%s1745_s7 + $0x20] sm:$0xff] }
  0x16   : > { %1212 = vmatmul.msk.bf16.vlgmr.msra.gmra.mxu1 %vm459_vm0, %v1318_v24  ;;  %1238 = vmatmul.msk.bf16.vlgmr.msra.gmra.mxu2 %vm459_vm0, %v1312_v25  ;;  %v1335_v24 = vld [vmem:[%s1745_s7 + $0x58] sm:$0xff] }
  0x17   : > { %1240 = vmatmul.msk.bf16.vlgmr.msra.gmra.mxu3 %vm459_vm0, %v1312_v25  ;;  %1340 = vmatpush.bf16.msrb.mxu2 %v1331_v15 }
  0x18   : > { %1348 = vmatpush.bf16.msrb.mxu3 %v1339_v16  ;;  %872 = vmatpush.bf16.msrb.mxu0 %v1331_v15 }
  0x19   : > { %891 = vmatpush.bf16.msrb.mxu1 %v1339_v16 }
  0x1b   : > { %1341 = vmatpush.bf16.msrb.mxu2 %v1330_v17 }
  0x1c   : > { %1349 = vmatpush.bf16.msrb.mxu3 %v1338_v18  ;;  %873 = vmatpush.bf16.msrb.mxu0 %v1330_v17 }
  0x1d   : > { %892 = vmatpush.bf16.msrb.mxu1 %v1338_v18 }
  0x1f   : > { %1342 = vmatpush.bf16.msrb.mxu2 %v1329_v19 }
  0x20   : > { %1350 = vmatpush.bf16.msrb.mxu3 %v1337_v20  ;;  %874 = vmatpush.bf16.msrb.mxu0 %v1329_v19  ;;  %v714_v19 = vld [vmem:[%s1744_s6] sm:$0x3] }
  0x21   : > { %893 = vmatpush.bf16.msrb.mxu1 %v1337_v20 }
  0x23   : > { %1343 = vmatpush.bf16.msrb.mxu2 %v1328_v21 }
  0x24   : > { %1351 = vmatpush.bf16.msrb.mxu3 %v1336_v22  ;;  %875 = vmatpush.bf16.msrb.mxu0 %v1328_v21 }
  0x25   : > { %1211 = vmatmul.msk.bf16.gmra.mxu0 %vm459_vm0, %v1319_v26  ;;  %894 = vmatpush.bf16.msrb.mxu1 %v1336_v22 }
  0x26   : > { %1213 = vmatmul.msk.bf16.gmra.mxu1 %vm459_vm0, %v1319_v26  ;;  %1239 = vmatmul.msk.bf16.gmra.mxu2 %vm459_vm0, %v1313_v27  ;;  %v1326_v26 = vld [vmem:[%s1745_s7 + $0x10] sm:$0xff] }
  0x27   : > { %1241 = vmatmul.msk.bf16.gmra.mxu3 %vm459_vm0, %v1313_v27  ;;  %1344 = vmatpush.bf16.msrb.mxu2 %v1327_v23  ;;  %v1334_v27 = vld [vmem:[%s1745_s7 + $0x50] sm:$0xff] }
  0x28   : > { %1352 = vmatpush.bf16.msrb.mxu3 %v1335_v24  ;;  %876 = vmatpush.bf16.msrb.mxu0 %v1327_v23 }
  0x29   : > { %895 = vmatpush.bf16.msrb.mxu1 %v1335_v24 }
  0x2b   : > { %1345 = vmatpush.bf16.msrb.mxu2 %v1326_v26 }
  0x2c   : > { %1353 = vmatpush.bf16.msrb.mxu3 %v1334_v27  ;;  %877 = vmatpush.bf16.msrb.mxu0 %v1326_v26  ;;  %v717_v26 = vperm.slane %v714_v19, 1 }
  0x2d   : > { %896 = vmatpush.bf16.msrb.mxu1 %v1334_v27 }
  0x92   : > { %v475_v28 = vpop.f32.mrf.mxu0 }
  0x93   : > { %v494_v29 = vpop.f32.mrf.mxu1 }
  0x99   : > { %v549_v33 = vpop.f32.mrf.mxu2 }
  0x9a   : > { %v568_v34 = vpop.f32.mrf.mxu3  ;;  %v550_v35 = vadd.f32 %v549_v33, %v475_v28  ;;  %v477_v39 = vpop.f32.mrf.mxu0  ;;  %v1325_v33 = vld [vmem:[%s1745_s7 + $0x8] sm:$0xff] }
  0x9b   : > { %v569_v36 = vadd.f32 %v568_v34, %v494_v29  ;;  %v496_v40 = vpop.f32.mrf.mxu1  ;;  %v1333_v34 = vld [vmem:[%s1745_s7 + $0x48] sm:$0xff]  ;;  %1346 = vmatpush.bf16.msrb.mxu2 %v1325_v33  ;;  %878 = vmatpush.bf16.msrb.mxu0 %v1325_v33 }
  0x9c   : > { %v1537_v37 = vadd.f32 %v580_v31, %v550_v35  ;;  %1354 = vmatpush.bf16.msrb.mxu3 %v1333_v34  ;;  %897 = vmatpush.bf16.msrb.mxu1 %v1333_v34 }
  0x9d   : > { %v1539_v38 = vadd.f32 %v581_v32, %v569_v36 }
  0x9e   : > { %v604_v9 = vmul.f32 %v1537_v37, %v1537_v37 }
  0x9f   : > { %v592_v41 = vadd.f32 %v1539_v38, %v1537_v37  ;;  %v605_v10 = vmul.f32 %v1539_v38, %v1539_v38 }
  0xa1   : > { %593 = vadd.xlane.f32.xlu2 %v592_v41  ;;  %v551_v42 = vpop.f32.mrf.mxu2  ;;  %v612_v13 = vadd.f32 %v605_v10, %v604_v9  ;;  %v1332_v41 = vld [vmem:[%s1745_s7 + $0x40] sm:$0xff] }
  0xa2   : > { %v570_v43 = vpop.f32.mrf.mxu3  ;;  %v552_v44 = vadd.f32 %v551_v42, %v477_v39  ;;  %v480_v48 = vpop.f32.mrf.mxu0  ;;  %1355 = vmatpush.bf16.msrb.mxu3 %v1332_v41  ;;  %898 = vmatpush.bf16.msrb.mxu1 %v1332_v41 }
  0xa3   : > { %v571_v45 = vadd.f32 %v570_v43, %v496_v40  ;;  %v499_v49 = vpop.f32.mrf.mxu1  ;;  %v1324_v40 = vld [vmem:[%s1745_s7] sm:$0xff] }
  0xa4   : > { %v1543_v46 = vadd.f32 %v580_v31, %v552_v44  ;;  %1347 = vmatpush.bf16.msrb.mxu2 %v1324_v40  ;;  %879 = vmatpush.bf16.msrb.mxu0 %v1324_v40 }
  0xa5   : > { %v1545_v47 = vadd.f32 %v581_v32, %v571_v45 }
  0xa6   : > { %v606_v11 = vmul.f32 %v1543_v46, %v1543_v46 }
  0xa7   : > { %v595_v50 = vadd.f32 %v1545_v47, %v1543_v46  ;;  %v607_v12 = vmul.f32 %v1545_v47, %v1545_v47 }
  0xa9   : > { %596 = vadd.xlane.f32.xlu2 %v595_v50  ;;  %v554_v51 = vpop.f32.mrf.mxu2  ;;  %v615_v14 = vadd.f32 %v607_v12, %v606_v11  ;;  %v700_v11 = vld [vmem:[%s1743_s5] sm:$0x3] }
  0xaa   : > { %v573_v52 = vpop.f32.mrf.mxu3  ;;  %v555_v53 = vadd.f32 %v554_v51, %v480_v48  ;;  %v482_v60 = vpop.f32.mrf.mxu0  ;;  %v1648_v17 = vperm.slane %v700_v11, 0  ;;  %v703_v21 = vperm.slane %v700_v11, 1 }
  0xab   : > { %v574_v54 = vadd.f32 %v573_v52, %v499_v49  ;;  %v501_v61 = vpop.f32.mrf.mxu1 }
  0xac   : > { %v1549_v55 = vadd.f32 %v580_v31, %v555_v53 }
  0xad   : > { %v1551_v56 = vadd.f32 %v581_v32, %v574_v54 }
  0xae   : > { %v608_v58 = vmul.f32 %v1549_v55, %v1549_v55 }
  0xaf   : > { %v598_v57 = vadd.f32 %v1551_v56, %v1549_v55  ;;  %v609_v59 = vmul.f32 %v1551_v56, %v1551_v56 }
  0xb1   : > { %599 = vadd.xlane.f32.xlu0 %v598_v57  ;;  %v618_v62 = vadd.f32 %v609_v59, %v608_v58  ;;  %v556_v63 = vpop.f32.mrf.mxu2 }
  0xb2   : > { %v575_v0 = vpop.f32.mrf.mxu3  ;;  %v557_v1 = vadd.f32 %v556_v63, %v482_v60 }
  0xb3   : > { %v576_v2 = vadd.f32 %v575_v0, %v501_v61  ;;  %619 = vadd.xlane.f32.xlu1 %v618_v62 }
  0xb4   : > { %v1559_v3 = vadd.f32 %v580_v31, %v557_v1 }
  0xb5   : > { %v1561_v4 = vadd.f32 %v581_v32, %v576_v2 }
  0xb6   : > { %v610_v6 = vmul.f32 %v1559_v3, %v1559_v3 }
  0xb7   : > { %v601_v5 = vadd.f32 %v1561_v4, %v1559_v3  ;;  %v611_v7 = vmul.f32 %v1561_v4, %v1561_v4 }
  0xb9   : > { %602 = vadd.xlane.f32.xlu0 %v601_v5  ;;  %v621_v8 = vadd.f32 %v611_v7, %v610_v6 }
  0xbb   : > { %622 = vadd.xlane.f32.xlu1 %v621_v8 }
  0xc1   : > { %613 = vadd.xlane.f32.xlu0 %v612_v13 }
  0xc3   : > { %616 = vadd.xlane.f32.xlu1 %v615_v14 }
 0x114   : > { %v594_v29 = vpop.xlane.xlu2 %593 }
 0x115   : > { %v1633_v49 = vmul.f32 0.00390625, %v594_v29 }
 0x117   : > { %v632_v59 = vmul.f32 %v1633_v49, %v1633_v49 }
 0x11c   : > { %v597_v48 = vpop.xlane.xlu2 %596 }
 0x11d   : > { %v1635_v52 = vmul.f32 0.00390625, %v597_v48 }
 0x11f   : > { %v633_v0 = vmul.f32 %v1635_v52, %v1635_v52 }
 0x124   : > { %v600_v25 = vpop.xlane.xlu0 %599 }
 0x125   : > { %v1613_v28 = vmul.f32 0.00390625, %v600_v25  ;;  %v716_v25 = vperm.slane %v714_v19, 0 }
 0x126   : > { %v620_v30 = vpop.xlane.xlu1 %619 }
 0x127   : > { %v630_v31 = vmul.f32 0.00390625, %v620_v30  ;;  %v634_v32 = vmul.f32 %v1613_v28, %v1613_v28  ;;  %v644_v12 = vsub.f32 %v1549_v55, %v1613_v28  ;;  %v645_v13 = vsub.f32 %v1551_v56, %v1613_v28 }
 0x129   : > { %v638_v35 = vsub.f32 %v630_v31, %v634_v32 }
 0x12b   : > { %v650_v36 = vadd.f32 1e-05, %v638_v35 }
 0x12c   : > { %v603_v39 = vpop.xlane.xlu0 %602 }
 0x12d   : > { %1367 = vrsqrt.f32 %v650_v36  ;;  %v1629_v42 = vmul.f32 0.00390625, %v603_v39  ;;  %vm678_vm2 = vweird.f32 %v650_v36 }
 0x12e   : > { %v623_v43 = vpop.xlane.xlu1 %622 }
 0x12f   : > { %v631_v44 = vmul.f32 0.00390625, %v623_v43  ;;  %v635_v45 = vmul.f32 %v1629_v42, %v1629_v42  ;;  %v646_v31 = vsub.f32 %v1559_v3, %v1629_v42  ;;  %v647_v32 = vsub.f32 %v1561_v4, %v1629_v42 }
 0x130   : > { %v641_v3 = vsub.f32 %v1539_v38, %v1633_v49 }
 0x131   : > { %v639_v50 = vsub.f32 %v631_v44, %v635_v45  ;;  %v640_v45 = vsub.f32 %v1537_v37, %v1633_v49 }
 0x133   : > { %v1368_v51 = vpop.eup %1367  ;;  %v651_v53 = vadd.f32 1e-05, %v639_v50 }
 0x134   : > { %v673_v54 = vmul.f32 %v1368_v51, %v650_v36  ;;  %v614_v57 = vpop.xlane.xlu0 %613  ;;  %vm679_vm1 = vweird.f32 %v1368_v51 }
 0x135   : > { %1369 = vrsqrt.f32 %v651_v53  ;;  %v628_v58 = vmul.f32 0.00390625, %v614_v57  ;;  %vm680_vm3 = vmor %vm678_vm2, %vm679_vm1  ;;  %vm688_vm5 = vweird.f32 %v651_v53 }
 0x136   : > { %v674_v60 = vmul.f32 %v1368_v51, %v673_v54  ;;  %v617_v61 = vpop.xlane.xlu1 %616 }
 0x137   : > { %v636_v62 = vsub.f32 %v628_v58, %v632_v59  ;;  %v629_v63 = vmul.f32 0.00390625, %v617_v61 }
 0x138   : > { %v675_v1 = vmul.f32 0.5, %v674_v60 }
 0x139   : > { %v648_v2 = vadd.f32 1e-05, %v636_v62  ;;  %v637_v5 = vsub.f32 %v629_v63, %v633_v0  ;;  %v643_v62 = vsub.f32 %v1545_v47, %v1635_v52 }
 0x13a   : > { %v676_v6 = vsub.f32 1.5, %v675_v1 }
 0x13b   : > { %v1370_v7 = vpop.eup %1369  ;;  %1371 = vrsqrt.f32 %v648_v2  ;;  %v649_v8 = vadd.f32 1e-05, %v637_v5  ;;  %vm658_vm8 = vweird.f32 %v648_v2 }
 0x13c   : > { %v677_v9 = vmul.f32 %v1368_v51, %v676_v6  ;;  %v683_v10 = vmul.f32 %v1370_v7, %v651_v53  ;;  %vm689_vm4 = vweird.f32 %v1370_v7 }
 0x13d   : > { %1373 = vrsqrt.f32 %v649_v8  ;;  %vm690_vm6 = vmor %vm688_vm5, %vm689_vm4  ;;  %vm668_vm11 = vweird.f32 %v649_v8 }
 0x13e   : > { %v681_v14 = vsel %vm680_vm3, %v1368_v51, %v677_v9  ;;  %v684_v15 = vmul.f32 %v1370_v7, %v683_v10  ;;  %v642_v51 = vsub.f32 %v1543_v46, %v1635_v52 }
 0x13f   : > { %v696_v16 = vmul.f32 %v681_v14, %v644_v12  ;;  %v697_v20 = vmul.f32 %v681_v14, %v645_v13 }
 0x140   : > { %v685_v18 = vmul.f32 0.5, %v684_v15 }
 0x141   : > { %v1372_v22 = vpop.eup %1371  ;;  %v710_v56 = vmul.f32 %v1648_v17, %v696_v16  ;;  %v711_v30 = vmul.f32 %v703_v21, %v697_v20 }
 0x142   : > { %v686_v23 = vsub.f32 1.5, %v685_v18  ;;  %v653_v55 = vmul.f32 %v1372_v22, %v648_v2  ;;  %vm659_vm7 = vweird.f32 %v1372_v22  ;;  %v1364_v18 = vld [vmem:[%s1746_s8] ss:$0 sm:$0xff] }
 0x143   : > { %v1374_v24 = vpop.eup %1373  ;;  %v724_v43 = vadd.f32 %v716_v25, %v710_v56  ;;  %v725_v44 = vadd.f32 %v717_v26, %v711_v30  ;;  %vm660_vm10 = vmor %vm658_vm8, %vm659_vm7 }
 0x144   : > { %v687_v27 = vmul.f32 %v1370_v7, %v686_v23  ;;  %v654_v28 = vmul.f32 %v1372_v22, %v653_v55  ;;  %v663_v29 = vmul.f32 %v1374_v24, %v649_v8  ;;  %vm669_vm9 = vweird.f32 %v1374_v24 }
 0x145   : > { %v732_v58 = vmax.f32 %v724_v43, 0.0  ;;  %v733_v59 = vmax.f32 %v725_v44, 0.0  ;;  %vm670_vm12 = vmor %vm668_vm11, %vm669_vm9 }
 0x146   : > { %v691_v33 = vsel %vm690_vm6, %v1370_v7, %v687_v27  ;;  %v655_v34 = vmul.f32 0.5, %v654_v28  ;;  %v664_v35 = vmul.f32 %v1374_v24, %v663_v29 }
 0x147   : > { %v698_v36 = vmul.f32 %v691_v33, %v646_v31  ;;  %v699_v39 = vmul.f32 %v691_v33, %v647_v32 }
 0x148   : > { %v656_v40 = vsub.f32 1.5, %v655_v34  ;;  %v665_v41 = vmul.f32 0.5, %v664_v35 }
 0x149   : > { %v712_v48 = vmul.f32 %v1648_v17, %v698_v36  ;;  %v713_v4 = vmul.f32 %v703_v21, %v699_v39 }
 0x14a   : > { %v657_v42 = vmul.f32 %v1372_v22, %v656_v40  ;;  %v666_v50 = vsub.f32 1.5, %v665_v41 }
 0x14b   : > { %v726_v53 = vadd.f32 %v716_v25, %v712_v48  ;;  %v727_v54 = vadd.f32 %v717_v26, %v713_v4 }
 0x14c   : > { %v661_v57 = vsel %vm660_vm10, %v1372_v22, %v657_v42  ;;  %v667_v37 = vmul.f32 %v1374_v24, %v666_v50 }
 0x14d   : > { %v734_v38 = vmax.f32 %v726_v53, 0.0  ;;  %v735_v49 = vmax.f32 %v727_v54, 0.0  ;;  %v692_v60 = vmul.f32 %v661_v57, %v640_v45  ;;  %v693_v61 = vmul.f32 %v661_v57, %v641_v3 }
 0x14e   : > { %v671_v63 = vsel %vm670_vm12, %v1374_v24, %v667_v37 }
 0x14f   : > { %v738_v0 = vpack.c.bf16 %v734_v38, %v732_v58  ;;  %v739_v46 = vpack.c.bf16 %v735_v49, %v733_v59  ;;  %v694_v1 = vmul.f32 %v671_v63, %v642_v51  ;;  %v706_v2 = vmul.f32 %v1648_v17, %v692_v60 }
 0x150   : > { %v695_v5 = vmul.f32 %v671_v63, %v643_v62  ;;  %v707_v6 = vmul.f32 %v703_v21, %v693_v61 }
 0x151   : > { %885 = vmatmul.bf16.vlgmr.msrb.gmra.mxu2 %v738_v0  ;;  %904 = vmatmul.bf16.vlgmr.msrb.gmra.mxu3 %v739_v46  ;;  %v708_v7 = vmul.f32 %v1648_v17, %v694_v1  ;;  %v720_v8 = vadd.f32 %v716_v25, %v706_v2 }
 0x152   : > { %v709_v9 = vmul.f32 %v703_v21, %v695_v5  ;;  %v721_v10 = vadd.f32 %v717_v26, %v707_v6 }
 0x153   : > { %v722_v11 = vadd.f32 %v716_v25, %v708_v7  ;;  %v728_v13 = vmax.f32 %v720_v8, 0.0 }
 0x154   : > { %v723_v12 = vadd.f32 %v717_v26, %v709_v9  ;;  %v729_v47 = vmax.f32 %v721_v10, 0.0 }
 0x155   : > { %v730_v14 = vmax.f32 %v722_v11, 0.0 }
 0x156   : > { %v731_v52 = vmax.f32 %v723_v12, 0.0 }
 0x157   : > { %v736_v15 = vpack.c.bf16 %v730_v14, %v728_v13 }
 0x158   : > { %v737_v16 = vpack.c.bf16 %v731_v52, %v729_v47 }
 0x159   : > { %880 = vmatmul.bf16.vlgmr.msrb.gmra.mxu0 %v736_v15 }
 0x15a   : > { %899 = vmatmul.bf16.vlgmr.msrb.gmra.mxu1 %v737_v16 }
 0x1d4   : > { %v886_v19 = vpop.f32.mrf.mxu2  ;;  %v905_v17 = vpop.f32.mrf.mxu3 }
 0x1d5   : > { %v887_v20 = vadd.f32 %v1364_v18, %v886_v19 }
 0x1d6   : > { %v881_v22 = vpop.f32.mrf.mxu0 }
 0x1d7   : > { %v1673_v21 = vadd.f32 %v905_v17, %v887_v20  ;;  %v882_v23 = vadd.f32 %v1364_v18, %v881_v22  ;;  %v900_v55 = vpop.f32.mrf.mxu1 }
 0x1d9   : > { %v1675_v24 = vadd.f32 %v900_v55, %v882_v23  ;;  %v917_v56 = vsel %vm910_vm13, %v1673_v21, 0.0  ;;  %v925_v41 = vmul.f32 %v1673_v21, %v1673_v21 }
 0x1da   : > { %918 = vadd.xlane.f32.xlu1 %v917_v56  ;;  %v1365_v56 = vld [vmem:[%s1747_s9] ss:$0 sm:$0xff] }
 0x1db   : > { %v911_v25 = vsel %vm910_vm13, %v1675_v24, 0.0  ;;  %v923_v28 = vmul.f32 %v1675_v24, %v1675_v24  ;;  %v933_v44 = vsel %vm910_vm13, %v925_v41, 0.0 }
 0x1dc   : > { %912 = vadd.xlane.f32.xlu2 %v911_v25  ;;  %v888_v29 = vpop.f32.mrf.mxu2  ;;  %v907_v39 = vpop.f32.mrf.mxu3 }
 0x1dd   : > { %v889_v32 = vadd.f32 %v1364_v18, %v888_v29  ;;  %v927_v34 = vsel %vm910_vm13, %v923_v28, 0.0  ;;  %v1366_v29 = vld [vmem:[%s1748_s10] ss:$0 sm:$0xff] }
 0x1de   : > { %v883_v26 = vpop.f32.mrf.mxu0 }
 0x1df   : > { %v884_v27 = vadd.f32 %v1364_v18, %v883_v26  ;;  %v902_v30 = vpop.f32.mrf.mxu1  ;;  %v1691_v40 = vadd.f32 %v907_v39, %v889_v32 }
 0x1e1   : > { %v1683_v31 = vadd.f32 %v902_v30, %v884_v27  ;;  %v920_v43 = vsel %vm910_vm13, %v1691_v40, 0.0  ;;  %v926_v45 = vmul.f32 %v1691_v40, %v1691_v40 }
 0x1e3   : > { %v914_v33 = vsel %vm910_vm13, %v1683_v31, 0.0  ;;  %v924_v35 = vmul.f32 %v1683_v31, %v1683_v31  ;;  %v936_v3 = vsel %vm910_vm13, %v926_v45, 0.0 }
 0x1e4   : > { %915 = vadd.xlane.f32.xlu0 %v914_v33  ;;  %928 = vadd.xlane.f32.xlu2 %v927_v34 }
 0x1e5   : > { %v930_v36 = vsel %vm910_vm13, %v924_v35, 0.0 }
 0x1e6   : > { %931 = vadd.xlane.f32.xlu1 %v930_v36 }
 0x1ec   : > { %921 = vadd.xlane.f32.xlu0 %v920_v43  ;;  %934 = vadd.xlane.f32.xlu2 %v933_v44 }
 0x1f4   : > { %937 = vadd.xlane.f32.xlu0 %v936_v3 }
 0x24d   : > { %v919_v4 = vpop.xlane.xlu1 %918 }
 0x24e   : > { %v1701_v49 = vmul.f32 0.0625, %v919_v4 }
 0x24f   : > { %v913_v48 = vpop.xlane.xlu2 %912 }
 0x250   : > { %v939_v42 = vmul.f32 0.0625, %v913_v48  ;;  %v949_v46 = vmul.f32 %v1701_v49, %v1701_v49 }
 0x252   : > { %v947_v53 = vmul.f32 %v939_v42, %v939_v42  ;;  %v955_v55 = vsub.f32 %v1675_v24, %v939_v42 }
 0x257   : > { %v916_v50 = vpop.xlane.xlu0 %915  ;;  %v929_v51 = vpop.xlane.xlu2 %928 }
 0x258   : > { %v940_v54 = vmul.f32 0.0625, %v916_v50  ;;  %v943_v57 = vmul.f32 0.0625, %v929_v51 }
 0x259   : > { %v932_v37 = vpop.xlane.xlu1 %931 }
 0x25a   : > { %v948_v58 = vmul.f32 %v940_v54, %v940_v54  ;;  %v951_v59 = vsub.f32 %v943_v57, %v947_v53  ;;  %v944_v38 = vmul.f32 0.0625, %v932_v37  ;;  %v956_v28 = vsub.f32 %v1683_v31, %v940_v54 }
 0x25b   : > { %v957_v31 = vsub.f32 %v1673_v21, %v1701_v49 }
 0x25c   : > { %v959_v60 = vadd.f32 1e-05, %v951_v59  ;;  %v952_v61 = vsub.f32 %v944_v38, %v948_v58 }
 0x25e   : > { %1375 = vrsqrt.f32 %v959_v60  ;;  %v960_v62 = vadd.f32 1e-05, %v952_v61  ;;  %vm969_vm15 = vweird.f32 %v959_v60 }
 0x25f   : > { %v922_v63 = vpop.xlane.xlu0 %921  ;;  %v935_v0 = vpop.xlane.xlu2 %934 }
 0x260   : > { %1377 = vrsqrt.f32 %v960_v62  ;;  %v945_v1 = vmul.f32 0.0625, %v935_v0  ;;  %v1705_v6 = vmul.f32 0.0625, %v922_v63  ;;  %vm979_vm2 = vweird.f32 %v960_v62 }
 0x262   : > { %v953_v2 = vsub.f32 %v945_v1, %v949_v46  ;;  %v950_v13 = vmul.f32 %v1705_v6, %v1705_v6  ;;  %v958_v21 = vsub.f32 %v1691_v40, %v1705_v6 }
 0x264   : > { %v1376_v5 = vpop.eup %1375  ;;  %v961_v7 = vadd.f32 1e-05, %v953_v2 }
 0x265   : > { %v964_v8 = vmul.f32 %v1376_v5, %v959_v60  ;;  %vm970_vm14 = vweird.f32 %v1376_v5 }
 0x266   : > { %v1378_v9 = vpop.eup %1377  ;;  %1379 = vrsqrt.f32 %v961_v7  ;;  %vm971_vm1 = vmor %vm969_vm15, %vm970_vm14  ;;  %vm989_vm5 = vweird.f32 %v961_v7 }
 0x267   : > { %v965_v10 = vmul.f32 %v1376_v5, %v964_v8  ;;  %v974_v11 = vmul.f32 %v1378_v9, %v960_v62  ;;  %v938_v12 = vpop.xlane.xlu0 %937  ;;  %vm980_vm0 = vweird.f32 %v1378_v9 }
 0x268   : > { %v946_v14 = vmul.f32 0.0625, %v938_v12  ;;  %vm981_vm3 = vmor %vm979_vm2, %vm980_vm0 }
 0x269   : > { %v966_v47 = vmul.f32 0.5, %v965_v10  ;;  %v975_v52 = vmul.f32 %v1378_v9, %v974_v11 }
 0x26a   : > { %v954_v15 = vsub.f32 %v946_v14, %v950_v13 }
 0x26b   : > { %v967_v16 = vsub.f32 1.5, %v966_v47  ;;  %v976_v18 = vmul.f32 0.5, %v975_v52 }
 0x26c   : > { %v1380_v19 = vpop.eup %1379  ;;  %v962_v20 = vadd.f32 1e-05, %v954_v15 }
 0x26d   : > { %v968_v17 = vmul.f32 %v1376_v5, %v967_v16  ;;  %v977_v22 = vsub.f32 1.5, %v976_v18  ;;  %v984_v23 = vmul.f32 %v1380_v19, %v961_v7  ;;  %vm990_vm4 = vweird.f32 %v1380_v19 }
 0x26e   : > { %1381 = vrsqrt.f32 %v962_v20  ;;  %vm991_vm6 = vmor %vm989_vm5, %vm990_vm4  ;;  %vm999_vm8 = vweird.f32 %v962_v20 }
 0x26f   : > { %v972_v25 = vsel %vm971_vm1, %v1376_v5, %v968_v17  ;;  %v978_v26 = vmul.f32 %v1378_v9, %v977_v22  ;;  %v985_v27 = vmul.f32 %v1380_v19, %v984_v23 }
 0x270   : > { %v1003_v30 = vmul.f32 %v972_v25, %v955_v55 }
 0x271   : > { %v982_v32 = vsel %vm981_vm3, %v1378_v9, %v978_v26  ;;  %v986_v24 = vmul.f32 0.5, %v985_v27 }
 0x272   : > { %v1011_v33 = vmul.f32 %v1365_v56, %v1003_v30  ;;  %v1004_v34 = vmul.f32 %v982_v32, %v956_v28 }
 0x273   : > { %v987_v35 = vsub.f32 1.5, %v986_v24 }
 0x274   : > { %v1382_v36 = vpop.eup %1381  ;;  %v1019_v39 = vadd.f32 %v1366_v29, %v1011_v33  ;;  %v1012_v41 = vmul.f32 %v1365_v56, %v1004_v34 }
 0x275   : > { %v988_v43 = vmul.f32 %v1380_v19, %v987_v35  ;;  %v994_v44 = vmul.f32 %v1382_v36, %v962_v20  ;;  %vm1000_vm7 = vweird.f32 %v1382_v36 }
 0x276   : > { %v1023_v45 = vmax.f32 %v1019_v39, 0.0  ;;  %v1020_v3 = vadd.f32 %v1366_v29, %v1012_v41  ;;  %vm1001_vm9 = vmor %vm999_vm8, %vm1000_vm7 }
 0x277   : > { %v992_v48 = vsel %vm991_vm6, %v1380_v19, %v988_v43  ;;  %v995_v4 = vmul.f32 %v1382_v36, %v994_v44 }
 0x278   : > { %v1306_v42 = vmul.f32 -1.442695, %v1023_v45  ;;  %v1024_v50 = vmax.f32 %v1020_v3, 0.0  ;;  %v1005_v51 = vmul.f32 %v992_v48, %v957_v31 }
 0x279   : > { %v996_v53 = vmul.f32 0.5, %v995_v4 }
 0x27a   : > { %1383 = vpow2.f32 %v1306_v42  ;;  %v1307_v54 = vmul.f32 -1.442695, %v1024_v50  ;;  %v1013_v57 = vmul.f32 %v1365_v56, %v1005_v51 }
 0x27b   : > { %v997_v37 = vsub.f32 1.5, %v996_v53 }
 0x27c   : > { %1385 = vpow2.f32 %v1307_v54  ;;  %v1021_v58 = vadd.f32 %v1366_v29, %v1013_v57 }
 0x27d   : > { %v998_v59 = vmul.f32 %v1382_v36, %v997_v37 }
 0x27e   : > { %v1025_v38 = vmax.f32 %v1021_v58, 0.0 }
 0x27f   : > { %v1002_v49 = vsel %vm1001_vm9, %v1382_v36, %v998_v59 }
 0x280   : > { %v1384_v60 = vpop.eup %1383  ;;  %v1308_v61 = vmul.f32 -1.442695, %v1025_v38  ;;  %v1006_v62 = vmul.f32 %v1002_v49, %v958_v21 }
 0x281   : > { %v1039_v63 = vadd.f32 1.0, %v1384_v60 }
 0x282   : > { %v1386_v0 = vpop.eup %1385  ;;  %1387 = vpow2.f32 %v1308_v61  ;;  %v1014_v46 = vmul.f32 %v1365_v56, %v1006_v62 }
 0x283   : > { %1389 = vrcp.f32 %v1039_v63  ;;  %v1040_v1 = vadd.f32 1.0, %v1386_v0  ;;  %v1054_v12 = vand.u32 2147483648, %v1039_v63  ;;  %v1052_v47 = vand.u32 2147483647, %v1039_v63 }
 0x284   : > { %v1022_v2 = vadd.f32 %v1366_v29, %v1014_v46  ;;  %vm1048_vm11 = vweird.f32 %v1039_v63 }
 0x285   : > { %1391 = vrcp.f32 %v1040_v1  ;;  %v1069_v16 = vand.u32 2147483648, %v1040_v1  ;;  %v1055_v19 = vor.u32 1.1754944e-38, %v1054_v12  ;;  %v1067_v17 = vand.u32 2147483647, %v1040_v1 }
 0x286   : > { %v1026_v5 = vmax.f32 %v1022_v2, 0.0  ;;  %vm1053_vm15 = vcmp.eq.f32.partialorder %v1052_v47, 8.507059e+37  ;;  %vm1063_vm0 = vweird.f32 %v1040_v1 }
 0x287   : > { %v1070_v27 = vor.u32 1.1754944e-38, %v1069_v16  ;;  %vm1068_vm2 = vcmp.eq.f32.partialorder %v1067_v17, 8.507059e+37 }
 0x288   : > { %v1388_v7 = vpop.eup %1387  ;;  %v1309_v40 = vmul.f32 -1.442695, %v1026_v5 }
 0x289   : > { %v1390_v8 = vpop.eup %1389  ;;  %v1041_v9 = vadd.f32 1.0, %v1388_v7 }
 0x28a   : > { %v1044_v6 = vmul.f32 %v1390_v8, %v1039_v63  ;;  %vm1049_vm10 = vweird.f32 %v1390_v8 }
 0x28b   : > { %1393 = vrcp.f32 %v1041_v9  ;;  %v1392_v10 = vpop.eup %1391  ;;  %vm1050_vm12 = vmor %vm1048_vm11, %vm1049_vm10  ;;  %v1084_v30 = vand.u32 2147483648, %v1041_v9  ;;  %v1082_v33 = vand.u32 2147483647, %v1041_v9  ;;  %vm1078_vm4 = vweird.f32 %v1041_v9 }
 0x28c   : > { %v1045_v11 = vsub.f32 1.0, %v1044_v6  ;;  %1395 = vpow2.f32 %v1309_v40  ;;  %v1059_v13 = vmul.f32 %v1392_v10, %v1040_v1  ;;  %vm1064_vm14 = vweird.f32 %v1392_v10 }
 0x28d   : > { %vm1065_vm1 = vmor %vm1063_vm0, %vm1064_vm14  ;;  %v1085_v35 = vor.u32 1.1754944e-38, %v1084_v30  ;;  %vm1083_vm6 = vcmp.eq.f32.partialorder %v1082_v33, 8.507059e+37 }
 0x28e   : > { %v1046_v14 = vmul.f32 %v1390_v8, %v1045_v11  ;;  %v1060_v52 = vsub.f32 1.0, %v1059_v13 }
 0x290   : > { %v1047_v15 = vadd.f32 %v1390_v8, %v1046_v14  ;;  %v1061_v20 = vmul.f32 %v1392_v10, %v1060_v52 }
 0x291   : > { %v1394_v18 = vpop.eup %1393 }
 0x292   : > { %v1396_v22 = vpop.eup %1395  ;;  %v1051_v23 = vsel %vm1050_vm12, %v1390_v8, %v1047_v15  ;;  %v1074_v55 = vmul.f32 %v1394_v18, %v1041_v9  ;;  %v1062_v25 = vadd.f32 %v1392_v10, %v1061_v20  ;;  %vm1079_vm3 = vweird.f32 %v1394_v18 }
 0x293   : > { %v1056_v56 = vsel %vm1053_vm15, %v1055_v19, %v1051_v23  ;;  %v1042_v26 = vadd.f32 1.0, %v1396_v22  ;;  %vm1080_vm5 = vmor %vm1078_vm4, %vm1079_vm3 }
 0x294   : > { %1103 = vst.msk [vmem:[%s1725_s21] sm:$0xff] %vm910_vm13, %v1056_v56  ;;  %v1075_v28 = vsub.f32 1.0, %v1074_v55  ;;  %v1066_v29 = vsel %vm1065_vm1, %v1392_v10, %v1062_v25 }
 0x295   : > { %1397 = vrcp.f32 %v1042_v26  ;;  %v1071_v32 = vsel %vm1068_vm2, %v1070_v27, %v1066_v29  ;;  %v1099_v31 = vand.u32 2147483648, %v1042_v26  ;;  %v1097_v3 = vand.u32 2147483647, %v1042_v26 }
 0x296   : > { %v1076_v24 = vmul.f32 %v1394_v18, %v1075_v28  ;;  %1104 = vst.msk [vmem:[%s1725_s21 + $0x8] sm:$0xff] %vm910_vm13, %v1071_v32  ;;  %vm1093_vm8 = vweird.f32 %v1042_v26 }
 0x297   : > { %v1100_v4 = vor.u32 1.1754944e-38, %v1099_v31  ;;  %vm1098_vm10 = vcmp.eq.f32.partialorder %v1097_v3, 8.507059e+37 }
 0x298   : > { %v1077_v34 = vadd.f32 %v1394_v18, %v1076_v24 }
 0x29a   : > { %v1081_v36 = vsel %vm1080_vm5, %v1394_v18, %v1077_v34 }
 0x29b   : > { %v1398_v39 = vpop.eup %1397  ;;  %v1086_v41 = vsel %vm1083_vm6, %v1085_v35, %v1081_v36 }
 0x29c   : > { %1105 = vst.msk [vmem:[%s1725_s21 + $0x10] sm:$0xff] %vm910_vm13, %v1086_v41  ;;  %v1089_v43 = vmul.f32 %v1398_v39, %v1042_v26  ;;  %vm1094_vm7 = vweird.f32 %v1398_v39 }
 0x29d   : > { %vm1095_vm9 = vmor %vm1093_vm8, %vm1094_vm7 }
 0x29e   : > { %v1090_v44 = vsub.f32 1.0, %v1089_v43 }
 0x2a0   : > { %v1091_v45 = vmul.f32 %v1398_v39, %v1090_v44 }
 0x2a2   : > { %v1092_v48 = vadd.f32 %v1398_v39, %v1091_v45 }
 0x2a4   : > { %v1096_v42 = vsel %vm1095_vm9, %v1398_v39, %v1092_v48 }
 0x2a5   : > { %v1101_v50 = vsel %vm1098_vm10, %v1100_v4, %v1096_v42 }
 0x2a6   : > { %1106 = vst.msk [vmem:[%s1725_s21 + $0x18] sm:$0xff] %vm910_vm13, %v1101_v50 }
 0x2a7 PF: > { %s21_s17 = sadd.s32 1, %s1405_s17  }
 0x2a8   : > { %p18_p4 = scmp.ge.s32.totalorder %s21_s17, 4  }
 0x2aa   :  { %20 = sbr.rel (!%p18_p4) target bundleno = 1 (0x1), region = 97 }

</bundles_post_ra>
